<compile_context>
chip_gen: v6e
topology: v6e:2x2x1
jax: 0.10.0
libtpu: 0.0.40
codegen_flags: <defaults>
</compile_context>

<pallas_src>
import functools

import numpy as np

import jax
import jax.numpy as jnp
from jax import lax
from jax.experimental import pallas as pl
from jax.experimental.pallas import tpu as pltpu


def _tconv_glu_kernel(x_ref, wp_ref, wq_ref, bp_ref, bq_ref, o_ref):
    # x_ref / o_ref : (R, hw_tile)   R = T*C sublane rows, lanes = spatial
    # wp_ref/wq_ref : (R, R)         banded conv weights (residual folded in wp)
    # bp_ref/bq_ref : (R, 1)         per-row bias for the p / q halves
    x = x_ref[...].astype(jnp.float32)
    p = jnp.dot(wp_ref[...], x, preferred_element_type=jnp.float32,
                precision=lax.Precision.HIGHEST) + bp_ref[...]
    q = jnp.dot(wq_ref[...], x, preferred_element_type=jnp.float32,
                precision=lax.Precision.HIGHEST) + bq_ref[...]
    o_ref[...] = (p * jax.nn.sigmoid(q)).astype(o_ref.dtype)


@functools.lru_cache(maxsize=None)
def _band_tables(T, C, k):
    """Static (R, R) gather tables mapping (out_row, in_row) -> flat Conv1d
    weight index for the p / q halves, plus a validity mask (time padding /
    kernel extent).  Rows are r = t*C + c."""
    pad = k // 2
    R = T * C
    idx_p = np.zeros((R, R), np.int32)
    idx_q = np.zeros((R, R), np.int32)
    valid = np.zeros((R, R), np.bool_)
    for r in range(R):                      # output row: out-channel c, time t
        t, c = divmod(r, C)
        for rin in range(R):                # input row: channel ic, time t_in
            t_in, ic = divmod(rin, C)
            dk = t_in - t + pad
            if 0 <= dk < k:
                valid[r, rin] = True
                # Conv1d weight shape (2C, C, k): flat index oc*C*k + ic*k + dk
                idx_p[r, rin] = c * (C * k) + ic * k + dk
                idx_q[r, rin] = (C + c) * (C * k) + ic * k + dk
    return idx_p, idx_q, valid


@jax.jit
def temporal_attention_layer(X, weight, bias):
    """X: (B, T, C, H, W).  weight: (2C, C, k) Conv1d weight.  bias: (2C,)."""
    B, T, C, H, W = X.shape
    twoC, C_in, k = weight.shape
    assert C_in == C and twoC == 2 * C and k % 2 == 1
    R = T * C
    HW = H * W
    itemsize = jnp.dtype(X.dtype).itemsize

    # --- trace-time precompute: banded (R, R) weight matrices ---------------
    idx_p, idx_q, valid = _band_tables(T, C, k)
    wflat = weight.astype(jnp.float32).reshape(-1)
    # residual "+ x_in" folded into W_p via the identity
    wp = jnp.where(valid, wflat[idx_p], 0.0) + jnp.eye(R, dtype=jnp.float32)
    wq = jnp.where(valid, wflat[idx_q], 0.0)
    bias_f = bias.astype(jnp.float32)
    bp = jnp.tile(bias_f[:C], T).reshape(R, 1)   # row r=t*C+c -> bias[c]
    bq = jnp.tile(bias_f[C:], T).reshape(R, 1)   # row r=t*C+c -> bias[C+c]
    # TODO(synk): for very large R (T*C >= ~2048) switch to the block-banded
    # (2C x C*k)-per-tap form instead of dense (R, R) matrices.

    # lane-dense view: pure reshape of contiguous adjacent dims (no relayout)
    x2d = X.reshape(B, R, HW)

    # --- HW tiling: lane-dense tiles sized from a v7x-safe VMEM budget ------
    if HW >= 128:
        # keep 2 x-bufs + 2 out-bufs under ~16 MiB (safe on v7x 64 MiB VMEM)
        lanes_cap = (16 * 1024 * 1024) // (4 * itemsize * max(R, 1))
        lanes_cap = max(128, (lanes_cap // 128) * 128)
        hw_tile = min(2048, lanes_cap, (HW // 128) * 128)
        # v7x megacore: prefer >= 2 total grid steps so both TCs get work
        if B == 1 and hw_tile >= HW and HW >= 256:
            hw_tile = max(128, ((HW // 2) // 128) * 128)
    else:
        # tiny spatial extent: whole lane dim in one (masked) block
        # TODO(synk): pad lanes to 128 for unmasked vst when HW < 128 matters.
        hw_tile = HW
    grid = (B, pl.cdiv(HW, hw_tile))        # ragged last HW block is masked

    block_bytes = R * hw_tile * itemsize
    vmem_needed = 4 * block_bytes + 2 * (2 * R * R * 4) + 4 * R * 4
    vmem_limit = int(min(max(2 * vmem_needed, 32 * 1024 * 1024),
                         56 * 1024 * 1024))

    flops = B * HW * (2 * 2 * R * R + 6 * R)            # 2 matmuls + epilogue
    bytes_accessed = 2 * B * R * HW * itemsize + 2 * R * R * 4 + 2 * R * 4

    out2d = pl.pallas_call(
        _tconv_glu_kernel,
        out_shape=jax.ShapeDtypeStruct((B, R, HW), X.dtype),
        grid=grid,
        in_specs=[
            pl.BlockSpec((None, R, hw_tile), lambda b, j: (b, 0, j)),
            pl.BlockSpec((R, R), lambda b, j: (0, 0)),
            pl.BlockSpec((R, R), lambda b, j: (0, 0)),
            pl.BlockSpec((R, 1), lambda b, j: (0, 0)),
            pl.BlockSpec((R, 1), lambda b, j: (0, 0)),
        ],
        out_specs=pl.BlockSpec((None, R, hw_tile), lambda b, j: (b, 0, j)),
        compiler_params=pltpu.CompilerParams(
            dimension_semantics=("parallel", "parallel"),
            vmem_limit_bytes=vmem_limit),
        cost_estimate=pl.CostEstimate(
            flops=flops, transcendentals=B * R * HW,
            bytes_accessed=bytes_accessed),
    )(x2d, wp, wq, bp, bq)

    return out2d.reshape(B, T, C, H, W)


def _reference(X, weight, bias):
    """Pure-JAX reference mirroring the PyTorch forward (for validation)."""
    B, T, C, H, W = X.shape
    x_in = jnp.transpose(X, (0, 3, 4, 2, 1)).reshape(-1, C, T)  # (N, C, T)
    y = lax.conv_general_dilated(
        x_in, weight, window_strides=(1,),
        padding=[(weight.shape[-1] // 2,) * 2],
        dimension_numbers=("NCH", "OIH", "NCH"))
    y = y + bias[None, :, None]
    p, q = y[:, :C, :], y[:, C:, :]
    glu = (p + x_in) * jax.nn.sigmoid(q)
    out = glu.reshape(B, H, W, C, T)
    return jnp.transpose(out, (0, 4, 3, 1, 2))


if __name__ == "__main__":
    B, T, C, H, W = 2, 8, 4, 16, 16
    kernel_size = 3

    key = jax.random.PRNGKey(0)
    kx, kw, kb = jax.random.split(key, 3)
    X = jax.random.normal(kx, (B, T, C, H, W), dtype=jnp.float32)
    # deterministic synthetic Conv1d params: weight (2C, C, k), bias (2C,)
    weight = 0.1 * jax.random.normal(kw, (2 * C, C, kernel_size),
                                     dtype=jnp.float32)
    bias = 0.1 * jax.random.normal(kb, (2 * C,), dtype=jnp.float32)

    out = jax.block_until_ready(temporal_attention_layer(X, weight, bias))
    ref = jax.block_until_ready(_reference(X, weight, bias))

    assert out.shape == (B, T, C, H, W)
    # MXU accumulation order / multi-pass f32 differs slightly from lax.conv,
    # so validate at 1e-3 (structural bugs would be orders of magnitude worse).
    assert jnp.allclose(out, ref, atol=1e-3, rtol=1e-3), "mismatch vs reference"

    print("KERNEL_OK")
</pallas_src>

<mosaic_0001>
module attributes {stable_mosaic.version = 11 : i64} {
  func.func @_tconv_glu_kernel(%arg0: i32, %arg1: i32, %arg2: memref<1x32x256xf32, #tpu.memory_space<vmem>>, %arg3: memref<32x32xf32, #tpu.memory_space<vmem>>, %arg4: memref<32x32xf32, #tpu.memory_space<vmem>>, %arg5: memref<32x1xf32, #tpu.memory_space<vmem>>, %arg6: memref<32x1xf32, #tpu.memory_space<vmem>>, %arg7: memref<1x32x256xf32, #tpu.memory_space<vmem>>) attributes {dimension_semantics = [#tpu.dimension_semantics<parallel>, #tpu.dimension_semantics<parallel>], iteration_bounds = array<i64: 2, 1>, scalar_prefetch = 0 : i64, scratch_operands = 0 : i64, tpu.core_type = #tpu.core_type<tc>, window_params = [{transform_indices = @transform_0, window_bounds = array<i64: 1, 32, 256>}, {pipeline_mode = #tpu.pipeline_mode<synchronous>, transform_indices = @transform_1, window_bounds = array<i64: 32, 32>}, {pipeline_mode = #tpu.pipeline_mode<synchronous>, transform_indices = @transform_2, window_bounds = array<i64: 32, 32>}, {pipeline_mode = #tpu.pipeline_mode<synchronous>, transform_indices = @transform_3, window_bounds = array<i64: 32, 1>}, {pipeline_mode = #tpu.pipeline_mode<synchronous>, transform_indices = @transform_4, window_bounds = array<i64: 32, 1>}, {transform_indices = @transform_5, window_bounds = array<i64: 1, 32, 256>}]} {
    %c0 = arith.constant 0 : index
    %c0_0 = arith.constant 0 : index
    %c0_1 = arith.constant 0 : index
    %0 = vector.load %arg2[%c0, %c0_0, %c0_1] : memref<1x32x256xf32, #tpu.memory_space<vmem>>, vector<1x32x256xf32>
    %1 = vector.shape_cast %0 : vector<1x32x256xf32> to vector<32x256xf32>
    %c0_2 = arith.constant 0 : index
    %c0_3 = arith.constant 0 : index
    %2 = vector.load %arg3[%c0_2, %c0_3] : memref<32x32xf32, #tpu.memory_space<vmem>>, vector<32x32xf32>
    %cst = arith.constant dense<0.000000e+00> : vector<32x256xf32>
    %3 = tpu.matmul %2, %1, %cst {dimension_numbers = #tpu.dot_dimension_numbers<[1], [0], [0], [1], [0, 0, 1, 1], [], []>, precision = #tpu.contract_precision<fp32>} : vector<32x32xf32>, vector<32x256xf32>, vector<32x256xf32> -> vector<32x256xf32>
    %c0_4 = arith.constant 0 : index
    %c0_5 = arith.constant 0 : index
    %4 = vector.load %arg5[%c0_4, %c0_5] : memref<32x1xf32, #tpu.memory_space<vmem>>, vector<32x1xf32>
    %5 = vector.broadcast %4 : vector<32x1xf32> to vector<32x256xf32>
    %6 = arith.addf %3, %5 : vector<32x256xf32>
    %c0_6 = arith.constant 0 : index
    %c0_7 = arith.constant 0 : index
    %7 = vector.load %arg4[%c0_6, %c0_7] : memref<32x32xf32, #tpu.memory_space<vmem>>, vector<32x32xf32>
    %cst_8 = arith.constant dense<0.000000e+00> : vector<32x256xf32>
    %8 = tpu.matmul %7, %1, %cst_8 {dimension_numbers = #tpu.dot_dimension_numbers<[1], [0], [0], [1], [0, 0, 1, 1], [], []>, precision = #tpu.contract_precision<fp32>} : vector<32x32xf32>, vector<32x256xf32>, vector<32x256xf32> -> vector<32x256xf32>
    %c0_9 = arith.constant 0 : index
    %c0_10 = arith.constant 0 : index
    %9 = vector.load %arg6[%c0_9, %c0_10] : memref<32x1xf32, #tpu.memory_space<vmem>>, vector<32x1xf32>
    %10 = vector.broadcast %9 : vector<32x1xf32> to vector<32x256xf32>
    %11 = arith.addf %8, %10 : vector<32x256xf32>
    %12 = arith.negf %11 : vector<32x256xf32>
    %13 = math.exp %12 : vector<32x256xf32>
    %cst_11 = arith.constant 1.000000e+00 : f32
    %14 = vector.broadcast %cst_11 : f32 to vector<32x256xf32>
    %15 = arith.addf %14, %13 : vector<32x256xf32>
    %16 = arith.divf %14, %15 : vector<32x256xf32>
    %17 = arith.mulf %6, %16 : vector<32x256xf32>
    %c0_12 = arith.constant 0 : index
    %c0_13 = arith.constant 0 : index
    %c0_14 = arith.constant 0 : index
    %18 = vector.load %arg7[%c0_12, %c0_13, %c0_14] : memref<1x32x256xf32, #tpu.memory_space<vmem>>, vector<1x32x256xf32>
    %19 = vector.shape_cast %18 : vector<1x32x256xf32> to vector<32x256xf32>
    %20 = vector.shape_cast %17 : vector<32x256xf32> to vector<1x32x256xf32>
    tpu.vector_store %arg7[%c0_12, %c0_13, %c0_14], %20 {strides = array<i32>} : memref<1x32x256xf32, #tpu.memory_space<vmem>>, vector<1x32x256xf32>,
    return
  }
  func.func @transform_0(%arg0: i32, %arg1: i32) -> (i32, i32, i32) {
    %c0_i32 = arith.constant 0 : i32
    %c0_i32_0 = arith.constant 0 : i32
    return %arg0, %c0_i32, %arg1 : i32, i32, i32
  }
  func.func @transform_1(%arg0: i32, %arg1: i32) -> (i32, i32) {
    %c0_i32 = arith.constant 0 : i32
    %c0_i32_0 = arith.constant 0 : i32
    %c0_i32_1 = arith.constant 0 : i32
    return %c0_i32, %c0_i32_0 : i32, i32
  }
  func.func @transform_2(%arg0: i32, %arg1: i32) -> (i32, i32) {
    %c0_i32 = arith.constant 0 : i32
    %c0_i32_0 = arith.constant 0 : i32
    %c0_i32_1 = arith.constant 0 : i32
    return %c0_i32, %c0_i32_0 : i32, i32
  }
  func.func @transform_3(%arg0: i32, %arg1: i32) -> (i32, i32) {
    %c0_i32 = arith.constant 0 : i32
    %c0_i32_0 = arith.constant 0 : i32
    %c0_i32_1 = arith.constant 0 : i32
    return %c0_i32, %c0_i32_0 : i32, i32
  }
  func.func @transform_4(%arg0: i32, %arg1: i32) -> (i32, i32) {
    %c0_i32 = arith.constant 0 : i32
    %c0_i32_0 = arith.constant 0 : i32
    %c0_i32_1 = arith.constant 0 : i32
    return %c0_i32, %c0_i32_0 : i32, i32
  }
  func.func @transform_5(%arg0: i32, %arg1: i32) -> (i32, i32, i32) {
    %c0_i32 = arith.constant 0 : i32
    %c0_i32_0 = arith.constant 0 : i32
    return %arg0, %c0_i32, %arg1 : i32, i32, i32
  }
}

</mosaic_0001>

<bundles_post_ra>
// kernel: tile.18
= control target key start
LH: loop header
LB: loop body
LE: loop exit
PB: predicated region body
PF: predicated region fallthrough
CT: control target
= control target key end

     0   :  { %s22_s0 = inlined_call_operand.vmem [shape: f32[4], index: 0, kind: input, shape index: {}]   ;;  %s23_s1 = inlined_call_operand.vmem [shape: f32[8,4], index: 1, kind: output, shape index: {}]  }
   0x1   :  { %v4_v0 = vld [vmem:[%s22_s0] ss:$0 sm:$0xff] }
   0x2   :  { %5 = vst [vmem:[%s23_s1] sm:$0xff] %v4_v0 }

// kernel: tile.0
= control target key start
LH: loop header
LB: loop body
LE: loop exit
PB: predicated region body
PF: predicated region fallthrough
CT: control target
= control target key end

     0   :  { %vm3_vm0 = vcmask 7168   ;;  %s30_s8 = smov 125   ;;  %s31_s11 = smov 126   ;;  %s57_s0 = inlined_call_operand.vmem [shape: f32[8,4], index: 0, kind: input, shape index: {}]   ;;  %s58_s1 = inlined_call_operand.vmem [shape: f32[32,1], index: 1, kind: output, shape index: {}]  }
   0x1   :  { %v5_v0 = vld [vmem:[%s57_s0] sm:$0xff]   ;;  %s29_s0 = smov 127  }
   0x2   :  { %6 = vrot.lane.b32.xlu0 %v5_v0, %s29_s0  ;;  %18 = vrot.lane.b32.xlu1 %v5_v0, %s30_s8  ;;  %4 = vst.msk [vmem:[%s58_s1] ss:$4 sm:$0xff] %vm3_vm0, %v5_v0  }
   0x6   :  { %12 = vrot.lane.b32.xlu0 %v5_v0, %s31_s11 }
  0x74   :  { %v7_v1 = vpop.permute.xlu0 %6   ;;  %v19_v2 = vpop.permute.xlu1 %18  }
  0x75   :  { %23 = vst.msk [vmem:[%s58_s1 + $0x1] ss:$4 sm:$0xff] %vm3_vm0, %v7_v1   ;;  %25 = vst.msk [vmem:[%s58_s1 + $0x3] ss:$4 sm:$0xff] %vm3_vm0, %v19_v2  }
  0x78   :  { %v13_v3 = vpop.permute.xlu0 %12  }
  0x79   :  { %24 = vst.msk [vmem:[%s58_s1 + $0x2] ss:$4 sm:$0xff] %vm3_vm0, %v13_v3  }

// kernel: temporal_attention_layer.1
= control target key start
LH: loop header
LB: loop body
LE: loop exit
PB: predicated region body
PF: predicated region fallthrough
CT: control target
= control target key end

     0   :  { %s2021_s18 = smov 0   ;;  %s2023_s19 = smov 0   ;;  %s2517_s0 = inlined_call_operand.vmem [shape: f32[2,32,256], index: 0, kind: input, shape index: {}]   ;;  %s2518_s1 = inlined_call_operand.vmem [shape: f32[32,32], index: 1, kind: input, shape index: {}]   ;;  %s2519_s2 = inlined_call_operand.vmem [shape: f32[32,32], index: 2, kind: input, shape index: {}]   ;;  %s2520_s3 = inlined_call_operand.vmem [shape: f32[32,1], index: 3, kind: input, shape index: {}]   ;;  %s2521_s4 = inlined_call_operand.vmem [shape: f32[32,1], index: 4, kind: input, shape index: {}]   ;;  %s2522_s5 = inlined_call_operand.vmem [shape: f32[2,32,256], index: 5, kind: output, shape index: {}]  }
   0x1   :  { %s2025_s20 = smov 0  }
   0x2 LB: > { %s27_s21 = sadd.s32 1, %s1983_s19  ;;  %p1888_p0 = scmp.ge.s32.totalorder %s1987_s20, 1  ;;  %s1987_s20 = sphi %s2025_s20, %s15_s20   ;;  %s1983_s19 = sphi %s2023_s19, %s2524_s19   ;;  %s1979_s18 = sphi %s2021_s18, %s2523_s18  }
   0x3   : > { %p29_p1 = scmp.ge.s32.totalorder %s27_s21, 2  ;;  %p208_p2 = scmp.lt.s32.totalorder %s1987_s20, 3 }
   0x5   : > { %s2526_s21 = smov (%p29_p1, %s27_s21), 0  ;;  %p209_p3 = pnand %p1888_p0, %p208_p2 }
   0x6   : > { %p245_p4 = scmp.lt.s32.totalorder (!%p209_p3), %s1979_s18, 1 }
   0x7   : > { %212 = sbr.rel (%p209_p3) target bundleno = 363 (0x16b), region = 40 }
   0xc   : > { %v272_v0 = vld [vmem:[%s2518_s1] sm:$0xff]  ;;  %vm300_vm0 = vcmask 261120   ;;  %v273_v1 = vld [vmem:[%s2518_s1 + $0x8] sm:$0xff]  ;;  %v274_v2 = vld [vmem:[%s2518_s1 + $0x10] sm:$0xff]  ;;  %v1989_v3 = vmov 0.0   ;;  %s2528_s18 = smov (!%p245_p4, %s1979_s18), 1 }
   0xd   : > { %385 = vmatprep.mubr.f32.mxu0 %v1989_v3  ;;  %v302_v4 = vsel %vm300_vm0, %v272_v0, 0  ;;  %v305_v5 = vsel %vm300_vm0, %v273_v1, 0  ;;  %534 = vmatprep.mubr.f32.mxu1 %v1989_v3  ;;  %v308_v6 = vsel %vm300_vm0, %v274_v2, 0  ;;  %v275_v7 = vld [vmem:[%s2518_s1 + $0x18] sm:$0xff]  ;;  %s1903_s30 = sshll.u32 %s2528_s18, 6 }
   0xe   : > { %v2058_v8 = vand.u32 4294901760, %v302_v4  ;;  %v2060_v9 = vand.u32 4294901760, %v305_v5  ;;  %v2062_v10 = vand.u32 4294901760, %v308_v6  ;;  %v311_v11 = vsel %vm300_vm0, %v275_v7, 0  ;;  %s252_s8 = scalar_lea.vmem %s2517_s0, %s1903_s30  ;;  %s262_s15 = scalar_lea.vmem %s2522_s5, %s1903_s30 }
   0xf   : > { %v2065_v12 = vand.u32 4294901760, %v311_v11  ;;  %v271_v16 = vld [vmem:[%s252_s8 + $0x38] sm:$0xff]  ;;  %v270_v17 = vld [vmem:[%s252_s8 + $0x30] sm:$0xff]  ;;  %v269_v18 = vld [vmem:[%s252_s8 + $0x28] sm:$0xff] }
  0x10   : > { %v2069_v13 = vsub.f32 %v302_v4, %v2058_v8  ;;  %v2072_v14 = vsub.f32 %v305_v5, %v2060_v9  ;;  %v2080_v15 = vsub.f32 %v308_v6, %v2062_v10  ;;  %v2084_v21 = vand.u32 4294901760, %v271_v16  ;;  %v268_v24 = vld [vmem:[%s252_s8 + $0x20] sm:$0xff]  ;;  %v267_v25 = vld [vmem:[%s252_s8 + $0x18] sm:$0xff]  ;;  %v266_v26 = vld [vmem:[%s252_s8 + $0x10] sm:$0xff] }
  0x11   : > { %v2086_v22 = vand.u32 4294901760, %v270_v17  ;;  %v2088_v23 = vand.u32 4294901760, %v269_v18  ;;  %v2091_v27 = vsub.f32 %v311_v11, %v2065_v12  ;;  %v2093_v28 = vand.u32 4294901760, %v268_v24  ;;  %v265_v31 = vld [vmem:[%s252_s8 + $0x8] sm:$0xff]  ;;  %v264_v32 = vld [vmem:[%s252_s8] sm:$0xff] }
  0x12   : > { %v388_v19 = vand.u32 4294901760, %v2069_v13  ;;  %v399_v20 = vand.u32 4294901760, %v2072_v14  ;;  %v2095_v29 = vand.u32 4294901760, %v267_v25  ;;  %v2097_v30 = vand.u32 4294901760, %v266_v26  ;;  %338 = vmatprep.subr.mxu0 %v2084_v21 }
  0x13   : > { %v2103_v34 = vand.u32 4294901760, %v265_v31  ;;  %v2106_v35 = vsub.f32 %v271_v16, %v2084_v21  ;;  %v2109_v36 = vsub.f32 %v270_v17, %v2086_v22  ;;  %v410_v37 = vand.u32 4294901760, %v2080_v15  ;;  %340 = vmatpush1.msra.mxu0 %v2086_v22 }
  0x14   : > { %v389_v33 = vsub.f32 %v2069_v13, %v388_v19  ;;  %v2113_v38 = vand.u32 4294901760, %v264_v32  ;;  %v2116_v40 = vsub.f32 %v269_v18, %v2088_v23  ;;  %v2119_v41 = vsub.f32 %v268_v24, %v2093_v28  ;;  %342 = vmatprep.subr.mxu0 %v2088_v23 }
  0x15   : > { %v2123_v42 = vand.u32 4294901760, %v2106_v35  ;;  %v2126_v43 = vand.u32 4294901760, %v2109_v36  ;;  %v2129_v44 = vsub.f32 %v267_v25, %v2095_v29  ;;  %v2132_v45 = vsub.f32 %v266_v26, %v2097_v30  ;;  %344 = vmatpush1.msra.mxu0 %v2093_v28  ;;  %v1003_v26 = vld [vmem:[%s2519_s2] sm:$0xff] }
  0x16   : > { %v390_v39 = vand.u32 4294901760, %v389_v33  ;;  %v2136_v46 = vand.u32 4294901760, %v2116_v40  ;;  %v2139_v47 = vand.u32 4294901760, %v2119_v41  ;;  %v400_v48 = vsub.f32 %v2072_v14, %v399_v20  ;;  %346 = vmatprep.subr.mxu0 %v2095_v29  ;;  %v1005_v33 = vld [vmem:[%s2519_s2 + $0x10] sm:$0xff] }
  0x17   : > { %v2145_v49 = vsub.f32 %v265_v31, %v2103_v34  ;;  %v457_v50 = vsub.f32 %v2106_v35, %v2123_v42  ;;  %v463_v51 = vsub.f32 %v2109_v36, %v2126_v43  ;;  %v2153_v52 = vand.u32 4294901760, %v2129_v44  ;;  %348 = vmatpush1.msra.mxu0 %v2097_v30 }
  0x18   : > { %v2156_v53 = vand.u32 4294901760, %v2132_v45  ;;  %v469_v54 = vsub.f32 %v2116_v40, %v2136_v46  ;;  %v475_v55 = vsub.f32 %v2119_v41, %v2139_v47  ;;  %v2167_v57 = vsub.f32 %v264_v32, %v2113_v38  ;;  %350 = vmatprep.subr.mxu0 %v2103_v34  ;;  %v1004_v32 = vld [vmem:[%s2519_s2 + $0x8] sm:$0xff] }
  0x19   : > { %v2164_v56 = vand.u32 4294901760, %v2145_v49  ;;  %v2170_v58 = vand.u32 4294901760, %v457_v50  ;;  %v2172_v59 = vand.u32 4294901760, %v463_v51  ;;  %v481_v60 = vsub.f32 %v2129_v44, %v2153_v52  ;;  %352 = vmatpush1.msra.mxu0 %v2113_v38 }
  0x1a   : > { %v487_v61 = vsub.f32 %v2132_v45, %v2156_v53  ;;  %v2179_v62 = vand.u32 4294901760, %v469_v54  ;;  %v2181_v63 = vand.u32 4294901760, %v475_v55  ;;  %v2186_v1 = vand.u32 4294901760, %v2167_v57  ;;  %391 = vmatmul.mubr.f32.vlgmr.msra.gmra.mxu0 %v390_v39  ;;  %589 = vmatprep.subr.mxu0 %v2106_v35 }
  0x1b   : > { %v493_v0 = vsub.f32 %v2145_v49, %v2164_v56  ;;  %459 = vmatprep.subr.mxu1 %v2170_v58  ;;  %v401_v2 = vand.u32 4294901760, %v400_v48  ;;  %v2189_v4 = vand.u32 4294901760, %v481_v60  ;;  %v411_v5 = vsub.f32 %v2080_v15, %v410_v37  ;;  %396 = vmatprep.mubr.f32.mxu0 %v1989_v3 }
  0x1c   : > { %v421_v6 = vand.u32 4294901760, %v2091_v27  ;;  %465 = vmatpush1.msra.mxu1 %v2172_v59  ;;  %v2197_v7 = vand.u32 4294901760, %v487_v61  ;;  %v499_v11 = vsub.f32 %v2167_v57, %v2186_v1  ;;  %592 = vmatpush1.msra.mxu0 %v2109_v36  ;;  %v1032_v31 = vsel %vm300_vm0, %v1003_v26, 0 }
  0x1d   : > { %471 = vmatprep.subr.mxu1 %v2179_v62  ;;  %v2202_v16 = vand.u32 4294901760, %v493_v0  ;;  %v412_v18 = vand.u32 4294901760, %v411_v5  ;;  %595 = vmatprep.subr.mxu0 %v2116_v40  ;;  %v1038_v39 = vsel %vm300_vm0, %v1005_v33, 0 }
  0x1e   : > { %477 = vmatpush1.msra.mxu1 %v2181_v63  ;;  %v2206_v17 = vand.u32 4294901760, %v499_v11  ;;  %402 = vmatmul.mubr.f32.gmra.mxu0 %v401_v2  ;;  %v422_v24 = vsub.f32 %v2091_v27, %v421_v6  ;;  %v2305_v50 = vand.u32 4294901760, %v1038_v39 }
  0x1f   : > { %483 = vmatprep.subr.mxu1 %v2189_v4  ;;  %407 = vmatprep.mubr.f32.mxu0 %v1989_v3 }
  0x20   : > { %489 = vmatpush1.msra.mxu1 %v2197_v7  ;;  %598 = vmatpush1.msra.mxu0 %v2119_v41  ;;  %v423_v25 = vand.u32 4294901760, %v422_v24  ;;  %v2321_v55 = vsub.f32 %v1038_v39, %v2305_v50 }
  0x21   : > { %495 = vmatprep.subr.mxu1 %v2202_v16  ;;  %601 = vmatprep.subr.mxu0 %v2129_v44 }
  0x22   : > { %501 = vmatpush1.msra.mxu1 %v2206_v17  ;;  %413 = vmatmul.mubr.f32.gmra.mxu0 %v412_v18 }
  0x23   : > { %536 = vmatmul.mubr.f32.vlgmr.msra.gmra.mxu1 %v2058_v8  ;;  %701 = vmatprep.subr.mxu1 %v2084_v21 }
  0x24   : > { %418 = vmatprep.mubr.f32.mxu0 %v1989_v3  ;;  %703 = vmatpush1.msra.mxu1 %v2086_v22 }
  0x25   : > { %541 = vmatprep.mubr.f32.mxu1 %v1989_v3  ;;  %705 = vmatprep.subr.mxu1 %v2088_v23 }
  0x26   : > { %424 = vmatmul.mubr.f32.gmra.mxu0 %v423_v25  ;;  %707 = vmatpush1.msra.mxu1 %v2093_v28 }
  0x27   : > { %543 = vmatmul.mubr.f32.gmra.mxu1 %v2060_v9  ;;  %604 = vmatpush1.msra.mxu0 %v2132_v45 }
  0x28   : > { %607 = vmatprep.subr.mxu0 %v2145_v49  ;;  %548 = vmatprep.mubr.f32.mxu1 %v1989_v3 }
  0x29   : > { %610 = vmatpush1.msra.mxu0 %v2167_v57  ;;  %643 = vmatprep.mubr.f32.mxu0 %v1989_v3 }
  0x2a   : > { %646 = vmatmul.mubr.f32.vlgmr.msra.gmra.mxu0 %v2069_v13  ;;  %709 = vmatprep.subr.mxu1 %v2095_v29  ;;  %v2268_v13 = vand.u32 4294901760, %v1032_v31 }
  0x2b   : > { %550 = vmatmul.mubr.f32.gmra.mxu1 %v2062_v10  ;;  %651 = vmatprep.mubr.f32.mxu0 %v1989_v3 }
  0x2c   : > { %555 = vmatprep.mubr.f32.mxu1 %v1989_v3  ;;  %711 = vmatpush1.msra.mxu1 %v2097_v30 }
  0x2d   : > { %713 = vmatprep.subr.mxu1 %v2103_v34  ;;  %812 = vmatprep.subr.mxu0 %v2123_v42 }
  0x2e   : > { %654 = vmatmul.mubr.f32.gmra.mxu0 %v2072_v14  ;;  %715 = vmatpush1.msra.mxu1 %v2113_v38  ;;  %v2284_v14 = vsub.f32 %v1032_v31, %v2268_v13 }
  0x2f   : > { %557 = vmatmul.mubr.f32.gmra.mxu1 %v2065_v12  ;;  %659 = vmatprep.mubr.f32.mxu0 %v1989_v3 }
  0x30   : > { %748 = vmatprep.mubr.f32.mxu1 %v1989_v3  ;;  %816 = vmatpush1.msra.mxu0 %v2126_v43 }
  0x31   : > { %927 = vmatprep.subr.mxu1 %v2084_v21  ;;  %820 = vmatprep.subr.mxu0 %v2136_v46 }
  0x32   : > { %662 = vmatmul.mubr.f32.gmra.mxu0 %v2080_v15  ;;  %v1006_v15 = vld [vmem:[%s2519_s2 + $0x18] sm:$0xff] }
  0x33   : > { %752 = vmatmul.mubr.f32.vlgmr.msra.gmra.mxu1 %v388_v19  ;;  %667 = vmatprep.mubr.f32.mxu0 %v1989_v3  ;;  %v1035_v19 = vsel %vm300_vm0, %v1004_v32, 0  ;;  %v1041_v51 = vsel %vm300_vm0, %v1006_v15, 0 }
  0x34   : > { %929 = vmatpush1.msra.mxu1 %v2086_v22  ;;  %757 = vmatprep.mubr.f32.mxu1 %v1989_v3  ;;  %v2323_v60 = vand.u32 4294901760, %v1041_v51 }
  0x35   : > { %824 = vmatpush1.msra.mxu0 %v2139_v47  ;;  %931 = vmatprep.subr.mxu1 %v2088_v23 }
  0x36   : > { %828 = vmatprep.subr.mxu0 %v2153_v52  ;;  %670 = vmatmul.mubr.f32.gmra.mxu0 %v2091_v27  ;;  %v2338_v61 = vsub.f32 %v1041_v51, %v2323_v60 }
  0x37   : > { %761 = vmatmul.mubr.f32.gmra.mxu1 %v399_v20  ;;  %832 = vmatpush1.msra.mxu0 %v2156_v53  ;;  %v2286_v20 = vand.u32 4294901760, %v1035_v19 }
  0x38   : > { %933 = vmatpush1.msra.mxu1 %v2093_v28  ;;  %836 = vmatprep.subr.mxu0 %v2164_v56  ;;  %v1151_v0 = vand.u32 4294901760, %v2338_v61 }
  0x39   : > { %766 = vmatprep.mubr.f32.mxu1 %v1989_v3  ;;  %840 = vmatpush1.msra.mxu0 %v2186_v1  ;;  %v2303_v48 = vsub.f32 %v1035_v19, %v2286_v20 }
  0x3a   : > { %873 = vmatprep.mubr.f32.mxu0 %v1989_v3  ;;  %935 = vmatprep.subr.mxu1 %v2095_v29 }
  0x3b   : > { %770 = vmatmul.mubr.f32.gmra.mxu1 %v410_v37  ;;  %875 = vmatmul.mubr.f32.vlgmr.msra.gmra.mxu0 %v2058_v8  ;;  %v1118_v37 = vand.u32 4294901760, %v2284_v14  ;;  %v1129_v54 = vand.u32 4294901760, %v2303_v48 }
  0x3c   : > { %775 = vmatprep.mubr.f32.mxu1 %v1989_v3  ;;  %937 = vmatpush1.msra.mxu1 %v2097_v30 }
  0x3d   : > { %880 = vmatprep.mubr.f32.mxu0 %v1989_v3  ;;  %939 = vmatprep.subr.mxu1 %v2103_v34  ;;  %v1119_v27 = vsub.f32 %v2284_v14, %v1118_v37 }
  0x3e   : > { %1068 = vmatprep.subr.mxu0 %v2084_v21  ;;  %941 = vmatpush1.msra.mxu1 %v2113_v38 }
  0x3f   : > { %779 = vmatmul.mubr.f32.gmra.mxu1 %v421_v6  ;;  %882 = vmatmul.mubr.f32.gmra.mxu0 %v2060_v9 }
  0x40   : > { %887 = vmatprep.mubr.f32.mxu0 %v1989_v3  ;;  %974 = vmatprep.mubr.f32.mxu1 %v1989_v3 }
  0x41   : > { %1070 = vmatpush1.msra.mxu0 %v2086_v22  ;;  %1189 = vmatprep.subr.mxu1 %v2170_v58  ;;  %v1130_v58 = vsub.f32 %v2303_v48, %v1129_v54 }
  0x42   : > { %1072 = vmatprep.subr.mxu0 %v2088_v23 }
  0x43   : > { %889 = vmatmul.mubr.f32.gmra.mxu0 %v2062_v10  ;;  %976 = vmatmul.mubr.f32.vlgmr.msra.gmra.mxu1 %v2058_v8  ;;  %v1120_v8 = vand.u32 4294901760, %v1119_v27 }
  0x44   : > { %1195 = vmatpush1.msra.mxu1 %v2172_v59  ;;  %894 = vmatprep.mubr.f32.mxu0 %v1989_v3  ;;  %v1140_v59 = vand.u32 4294901760, %v2321_v55 }
  0x45   : > { %981 = vmatprep.mubr.f32.mxu1 %v1989_v3  ;;  %1074 = vmatpush1.msra.mxu0 %v2093_v28 }
  0x46   : > { %1076 = vmatprep.subr.mxu0 %v2095_v29  ;;  %1201 = vmatprep.subr.mxu1 %v2179_v62  ;;  %v1141_v62 = vsub.f32 %v2321_v55, %v1140_v59 }
  0x47   : > { %896 = vmatmul.mubr.f32.gmra.mxu0 %v2065_v12  ;;  %983 = vmatmul.mubr.f32.gmra.mxu1 %v2060_v9  ;;  %v1131_v9 = vand.u32 4294901760, %v1130_v58 }
  0x48   : > { %1078 = vmatpush1.msra.mxu0 %v2097_v30  ;;  %1207 = vmatpush1.msra.mxu1 %v2181_v63  ;;  %v1152_v63 = vsub.f32 %v2338_v61, %v1151_v0 }
  0x49   : > { %1080 = vmatprep.subr.mxu0 %v2103_v34  ;;  %988 = vmatprep.mubr.f32.mxu1 %v1989_v3 }
  0x4a   : > { %1082 = vmatpush1.msra.mxu0 %v2113_v38  ;;  %1115 = vmatprep.mubr.f32.mxu0 %v1989_v3 }
  0x4b   : > { %990 = vmatmul.mubr.f32.gmra.mxu1 %v2062_v10  ;;  %1121 = vmatmul.mubr.f32.vlgmr.msra.gmra.mxu0 %v1120_v8  ;;  %v1142_v10 = vand.u32 4294901760, %v1141_v62 }
  0x4c   : > { %1213 = vmatprep.subr.mxu1 %v2189_v4  ;;  %995 = vmatprep.mubr.f32.mxu1 %v1989_v3 }
  0x4d   : > { %1219 = vmatpush1.msra.mxu1 %v2197_v7  ;;  %1126 = vmatprep.mubr.f32.mxu0 %v1989_v3 }
  0x4e   : > { %1225 = vmatprep.subr.mxu1 %v2202_v16  ;;  %1319 = vmatprep.subr.mxu0 %v2106_v35  ;;  %v1007_v35 = vld [vmem:[%s2521_s4] sm:$0xff] }
  0x4f   : > { %997 = vmatmul.mubr.f32.gmra.mxu1 %v2065_v12  ;;  %1132 = vmatmul.mubr.f32.gmra.mxu0 %v1131_v9  ;;  %v1153_v12 = vand.u32 4294901760, %v1152_v63 }
  0x50   : > { %1231 = vmatpush1.msra.mxu1 %v2206_v17  ;;  %1137 = vmatprep.mubr.f32.mxu0 %v1989_v3 }
  0x51   : > { %1264 = vmatprep.mubr.f32.mxu1 %v1989_v3  ;;  %1322 = vmatpush1.msra.mxu0 %v2109_v36  ;;  %v1990_v36 = vmov 0  }
  0x52   : > { %1431 = vmatprep.subr.mxu1 %v2084_v21  ;;  %1325 = vmatprep.subr.mxu0 %v2116_v40  ;;  %v1009_v40 = vld [vmem:[%s2521_s4 + $0x10] sm:$0xff] }
  0x53   : > { %1143 = vmatmul.mubr.f32.gmra.mxu0 %v1142_v10  ;;  %1266 = vmatmul.mubr.f32.vlgmr.msra.gmra.mxu1 %v2268_v13 }
  0x54   : > { %1433 = vmatpush1.msra.mxu1 %v2086_v22  ;;  %1148 = vmatprep.mubr.f32.mxu0 %v1989_v3 }
  0x55   : > { %1271 = vmatprep.mubr.f32.mxu1 %v1989_v3  ;;  %1328 = vmatpush1.msra.mxu0 %v2119_v41  ;;  %v1008_v41 = vld [vmem:[%s2521_s4 + $0x8] sm:$0xff] }
  0x56   : > { %1331 = vmatprep.subr.mxu0 %v2129_v44  ;;  %1435 = vmatprep.subr.mxu1 %v2088_v23 }
  0x57   : > { %1154 = vmatmul.mubr.f32.gmra.mxu0 %v1153_v12  ;;  %1273 = vmatmul.mubr.f32.gmra.mxu1 %v2286_v20 }
  0x58   : > { %1334 = vmatpush1.msra.mxu0 %v2132_v45  ;;  %1437 = vmatpush1.msra.mxu1 %v2093_v28 }
  0x59   : > { %1337 = vmatprep.subr.mxu0 %v2145_v49  ;;  %1278 = vmatprep.mubr.f32.mxu1 %v1989_v3 }
  0x5a   : > { %1340 = vmatpush1.msra.mxu0 %v2167_v57  ;;  %1373 = vmatprep.mubr.f32.mxu0 %v1989_v3 }
  0x5b   : > { %1280 = vmatmul.mubr.f32.gmra.mxu1 %v2305_v50  ;;  %1376 = vmatmul.mubr.f32.vlgmr.msra.gmra.mxu0 %v2284_v14 }
  0x5c   : > { %1439 = vmatprep.subr.mxu1 %v2095_v29  ;;  %1931 = vset.pattern.permute.xlu0 %v1990_v36 }
  0x5d   : > { %1441 = vmatpush1.msra.mxu1 %v2097_v30  ;;  %1285 = vmatprep.mubr.f32.mxu1 %v1989_v3 }
  0x5e   : > { %1381 = vmatprep.mubr.f32.mxu0 %v1989_v3  ;;  %1013 = vperm.xlu0 %1931, %v1007_v35  }
  0x5f   : > { %1287 = vmatmul.mubr.f32.gmra.mxu1 %v2323_v60  ;;  %1384 = vmatmul.mubr.f32.gmra.mxu0 %v2303_v48 }
  0x60   : > { %1443 = vmatprep.subr.mxu1 %v2103_v34  ;;  %1542 = vmatprep.subr.mxu0 %v2123_v42  ;;  %v1010_v42 = vld [vmem:[%s2521_s4 + $0x18] sm:$0xff] }
  0x61   : > { %1445 = vmatpush1.msra.mxu1 %v2113_v38  ;;  %1932 = vset.pattern.permute.xlu1 %v1990_v36 }
  0x62   : > { %1389 = vmatprep.mubr.f32.mxu0 %v1989_v3  ;;  %1478 = vmatprep.mubr.f32.mxu1 %v1989_v3 }
  0x63   : > { %1546 = vmatpush1.msra.mxu0 %v2126_v43  ;;  %1023 = vperm.xlu1 %1932, %v1009_v40   ;;  %v276_v43 = vld [vmem:[%s2520_s3] sm:$0xff] }
  0x64   : > { %1018 = vperm.xlu0 %1931, %v1008_v41   ;;  %1392 = vmatmul.mubr.f32.gmra.mxu0 %v2321_v55 }
  0x65   : > { %1482 = vmatmul.mubr.f32.vlgmr.msra.gmra.mxu1 %v1118_v37  ;;  %1657 = vmatprep.subr.mxu1 %v2084_v21  ;;  %v277_v21 = vld [vmem:[%s2520_s3 + $0x8] sm:$0xff] }
  0x66   : > { %1659 = vmatpush1.msra.mxu1 %v2086_v22  ;;  %1550 = vmatprep.subr.mxu0 %v2136_v46  ;;  %v278_v22 = vld [vmem:[%s2520_s3 + $0x10] sm:$0xff] }
  0x67   : > { %1397 = vmatprep.mubr.f32.mxu0 %v1989_v3  ;;  %1487 = vmatprep.mubr.f32.mxu1 %v1989_v3 }
  0x68   : > { %1554 = vmatpush1.msra.mxu0 %v2139_v47  ;;  %1028 = vperm.xlu1 %1932, %v1010_v42  }
  0x69   : > { %282 = vperm.xlu0 %1931, %v276_v43   ;;  %1400 = vmatmul.mubr.f32.gmra.mxu0 %v2338_v61 }
  0x6a   : > { %1491 = vmatmul.mubr.f32.gmra.mxu1 %v1129_v54  ;;  %1558 = vmatprep.subr.mxu0 %v2153_v52 }
  0x6b   : > { %1661 = vmatprep.subr.mxu1 %v2088_v23  ;;  %1562 = vmatpush1.msra.mxu0 %v2156_v53  ;;  %v279_v23 = vld [vmem:[%s2520_s3 + $0x18] sm:$0xff] }
  0x6c   : > { %1663 = vmatpush1.msra.mxu1 %v2093_v28  ;;  %1566 = vmatprep.subr.mxu0 %v2164_v56 }
  0x6d   : > { %1496 = vmatprep.mubr.f32.mxu1 %v1989_v3  ;;  %1570 = vmatpush1.msra.mxu0 %v2186_v1 }
  0x6e   : > { %1603 = vmatprep.mubr.f32.mxu0 %v1989_v3  ;;  %287 = vperm.xlu1 %1932, %v277_v21  }
  0x6f   : > { %1500 = vmatmul.mubr.f32.gmra.mxu1 %v1140_v59  ;;  %1605 = vmatmul.mubr.f32.vlgmr.msra.gmra.mxu0 %v2268_v13 }
  0x70   : > { %1665 = vmatprep.subr.mxu1 %v2095_v29  ;;  %1505 = vmatprep.mubr.f32.mxu1 %v1989_v3 }
  0x71   : > { %1667 = vmatpush1.msra.mxu1 %v2097_v30  ;;  %1610 = vmatprep.mubr.f32.mxu0 %v1989_v3 }
  0x72   : > { %292 = vperm.xlu0 %1931, %v278_v22   ;;  %1669 = vmatprep.subr.mxu1 %v2103_v34 }
  0x73   : > { %1509 = vmatmul.mubr.f32.gmra.mxu1 %v1151_v0  ;;  %1612 = vmatmul.mubr.f32.gmra.mxu0 %v2286_v20 }
  0x74   : > { %1671 = vmatpush1.msra.mxu1 %v2113_v38  ;;  %1617 = vmatprep.mubr.f32.mxu0 %v1989_v3 }
  0x75   : > { %1704 = vmatprep.mubr.f32.mxu1 %v1989_v3  ;;  %297 = vperm.xlu1 %1932, %v279_v23  }
  0x77   : > { %1619 = vmatmul.mubr.f32.gmra.mxu0 %v2305_v50  ;;  %1706 = vmatmul.mubr.f32.vlgmr.msra.gmra.mxu1 %v2268_v13 }
  0x78   : > { %1624 = vmatprep.mubr.f32.mxu0 %v1989_v3  ;;  %1711 = vmatprep.mubr.f32.mxu1 %v1989_v3 }
  0x7b   : > { %1626 = vmatmul.mubr.f32.gmra.mxu0 %v2323_v60  ;;  %1713 = vmatmul.mubr.f32.gmra.mxu1 %v2286_v20 }
  0x7c   : > { %1718 = vmatprep.mubr.f32.mxu1 %v1989_v3 }
  0x7f   : > { %1720 = vmatmul.mubr.f32.gmra.mxu1 %v2305_v50 }
  0x80   : > { %1725 = vmatprep.mubr.f32.mxu1 %v1989_v3 }
  0x83   : > { %1727 = vmatmul.mubr.f32.gmra.mxu1 %v2323_v60 }
  0xd9   : > { %v2463_v28 = vpop.permute.xlu0 %1013 }
  0xda   : > { %v392_v29 = vpop.f32.mrf.mxu0 }
  0xdc   : > { %v394_v30 = vpop.f32.mrf.mxu0 }
  0xde   : > { %v2465_v34 = vpop.permute.xlu1 %1023  ;;  %v403_v44 = vpop.f32.mrf.mxu0 }
  0xdf   : > { %v2467_v38 = vpop.permute.xlu0 %1018 }
  0xe0   : > { %v405_v45 = vpop.f32.mrf.mxu0 }
  0xe2   : > { %v414_v47 = vpop.f32.mrf.mxu0 }
  0xe3   : > { %v2469_v46 = vpop.permute.xlu1 %1028  ;;  %v537_v52 = vpop.f32.mrf.mxu1 }
  0xe4   : > { %v283_v49 = vpop.permute.xlu0 %282  ;;  %v416_v3 = vpop.f32.mrf.mxu0 }
  0xe5   : > { %v393_v53 = vadd.f32 %v392_v29, %v283_v49  ;;  %v395_v56 = vadd.f32 %v394_v30, %v283_v49  ;;  %v539_v57 = vpop.f32.mrf.mxu1 }
  0xe6   : > { %v425_v4 = vpop.f32.mrf.mxu0 }
  0xe7   : > { %v538_v1 = vadd.f32 %v537_v52, %v393_v53  ;;  %v540_v2 = vadd.f32 %v539_v57, %v395_v56  ;;  %v544_v5 = vpop.f32.mrf.mxu1 }
  0xe8   : > { %v427_v7 = vpop.f32.mrf.mxu0 }
  0xe9   : > { %v288_v6 = vpop.permute.xlu1 %287  ;;  %v546_v17 = vpop.f32.mrf.mxu1 }
  0xea   : > { %v404_v11 = vadd.f32 %v403_v44, %v288_v6  ;;  %v406_v16 = vadd.f32 %v405_v45, %v288_v6  ;;  %v647_v18 = vpop.f32.mrf.mxu0 }
  0xeb   : > { %v551_v26 = vpop.f32.mrf.mxu1  ;;  %v648_v31 = vadd.f32 %v647_v18, %v538_v1 }
  0xec   : > { %v545_v24 = vadd.f32 %v544_v5, %v404_v11  ;;  %v547_v25 = vadd.f32 %v546_v17, %v406_v16  ;;  %v649_v13 = vpop.f32.mrf.mxu0 }
  0xed   : > { %v293_v32 = vpop.permute.xlu0 %292  ;;  %v553_v14 = vpop.f32.mrf.mxu1  ;;  %v650_v20 = vadd.f32 %v649_v13, %v540_v2 }
  0xee   : > { %v415_v19 = vadd.f32 %v414_v47, %v293_v32  ;;  %v417_v33 = vadd.f32 %v416_v3, %v293_v32  ;;  %v655_v39 = vpop.f32.mrf.mxu0 }
  0xef   : > { %v558_v50 = vpop.f32.mrf.mxu1  ;;  %v656_v51 = vadd.f32 %v655_v39, %v545_v24 }
  0xf0   : > { %v552_v15 = vadd.f32 %v551_v26, %v415_v19  ;;  %v554_v37 = vadd.f32 %v553_v14, %v417_v33  ;;  %v298_v48 = vpop.permute.xlu1 %297  ;;  %v657_v55 = vpop.f32.mrf.mxu0 }
  0xf1   : > { %v426_v27 = vadd.f32 %v425_v4, %v298_v48  ;;  %v428_v54 = vadd.f32 %v427_v7, %v298_v48  ;;  %v560_v60 = vpop.f32.mrf.mxu1  ;;  %v658_v8 = vadd.f32 %v657_v55, %v547_v25 }
  0xf2   : > { %v663_v61 = vpop.f32.mrf.mxu0 }
  0xf3   : > { %v559_v58 = vadd.f32 %v558_v50, %v426_v27  ;;  %v561_v59 = vadd.f32 %v560_v60, %v428_v54  ;;  %v664_v9 = vadd.f32 %v663_v61, %v552_v15  ;;  %v753_v62 = vpop.f32.mrf.mxu1 }
  0xf4   : > { %v754_v0 = vadd.f32 %v753_v62, %v648_v31  ;;  %v665_v10 = vpop.f32.mrf.mxu0 }
  0xf5   : > { %v666_v63 = vadd.f32 %v665_v10, %v554_v37  ;;  %v755_v12 = vpop.f32.mrf.mxu1 }
  0xf6   : > { %v756_v35 = vadd.f32 %v755_v12, %v650_v20  ;;  %v671_v36 = vpop.f32.mrf.mxu0 }
  0xf7   : > { %v672_v40 = vadd.f32 %v671_v36, %v559_v58  ;;  %v762_v41 = vpop.f32.mrf.mxu1 }
  0xf8   : > { %v763_v42 = vadd.f32 %v762_v41, %v656_v51  ;;  %v673_v43 = vpop.f32.mrf.mxu0 }
  0xf9   : > { %v674_v21 = vadd.f32 %v673_v43, %v561_v59  ;;  %v764_v22 = vpop.f32.mrf.mxu1 }
  0xfa   : > { %v765_v23 = vadd.f32 %v764_v22, %v658_v8 }
  0xfb   : > { %v876_v29 = vpop.f32.mrf.mxu0  ;;  %v771_v30 = vpop.f32.mrf.mxu1 }
  0xfc   : > { %v877_v44 = vadd.f32 %v876_v29, %v754_v0  ;;  %v772_v45 = vadd.f32 %v771_v30, %v664_v9 }
  0xfd   : > { %v878_v47 = vpop.f32.mrf.mxu0  ;;  %v773_v49 = vpop.f32.mrf.mxu1 }
  0xfe   : > { %v879_v52 = vadd.f32 %v878_v47, %v756_v35  ;;  %v774_v53 = vadd.f32 %v773_v49, %v666_v63 }
  0xff   : > { %v883_v56 = vpop.f32.mrf.mxu0  ;;  %v780_v3 = vpop.f32.mrf.mxu1 }
 0x100   : > { %v884_v57 = vadd.f32 %v883_v56, %v763_v42  ;;  %v781_v1 = vadd.f32 %v780_v3, %v672_v40 }
 0x101   : > { %v885_v2 = vpop.f32.mrf.mxu0  ;;  %v782_v4 = vpop.f32.mrf.mxu1 }
 0x102   : > { %v886_v5 = vadd.f32 %v885_v2, %v765_v23  ;;  %v783_v6 = vadd.f32 %v782_v4, %v674_v21 }
 0x103   : > { %v890_v7 = vpop.f32.mrf.mxu0  ;;  %v977_v16 = vpop.f32.mrf.mxu1 }
 0x104   : > { %v891_v11 = vadd.f32 %v890_v7, %v772_v45  ;;  %v2471_v17 = vadd.f32 %v977_v16, %v877_v44 }
 0x105   : > { %v892_v18 = vpop.f32.mrf.mxu0  ;;  %v979_v25 = vpop.f32.mrf.mxu1 }
 0x106   : > { %v893_v24 = vadd.f32 %v892_v18, %v774_v53  ;;  %v2473_v26 = vadd.f32 %v979_v25, %v879_v52 }
 0x107   : > { %v897_v31 = vpop.f32.mrf.mxu0  ;;  %v984_v13 = vpop.f32.mrf.mxu1 }
 0x108   : > { %v898_v32 = vadd.f32 %v897_v31, %v781_v1  ;;  %v2475_v19 = vadd.f32 %v984_v13, %v884_v57 }
 0x109   : > { %v899_v33 = vpop.f32.mrf.mxu0  ;;  %v986_v20 = vpop.f32.mrf.mxu1 }
 0x10a   : > { %v900_v14 = vadd.f32 %v899_v33, %v783_v6  ;;  %v2477_v39 = vadd.f32 %v986_v20, %v886_v5 }
 0x10b   : > { %v1122_v15 = vpop.f32.mrf.mxu0  ;;  %v991_v37 = vpop.f32.mrf.mxu1 }
 0x10c   : > { %v2479_v48 = vadd.f32 %v991_v37, %v891_v11  ;;  %v1123_v53 = vadd.f32 %v1122_v15, %v2463_v28 }
 0x10d   : > { %v1124_v50 = vpop.f32.mrf.mxu0  ;;  %v993_v51 = vpop.f32.mrf.mxu1 }
 0x10e   : > { %v2481_v27 = vadd.f32 %v993_v51, %v893_v24  ;;  %v1125_v1 = vadd.f32 %v1124_v50, %v2463_v28 }
 0x10f   : > { %v1133_v54 = vpop.f32.mrf.mxu0  ;;  %v998_v55 = vpop.f32.mrf.mxu1 }
 0x110   : > { %v2483_v60 = vadd.f32 %v998_v55, %v898_v32  ;;  %v1134_v2 = vadd.f32 %v1133_v54, %v2467_v38 }
 0x111   : > { %v1135_v8 = vpop.f32.mrf.mxu0  ;;  %v1000_v58 = vpop.f32.mrf.mxu1 }
 0x112   : > { %v2485_v59 = vadd.f32 %v1000_v58, %v900_v14  ;;  %v1136_v25 = vadd.f32 %v1135_v8, %v2467_v38 }
 0x113   : > { %v1144_v61 = vpop.f32.mrf.mxu0  ;;  %v1267_v9 = vpop.f32.mrf.mxu1 }
 0x114   : > { %v1268_v4 = vadd.f32 %v1267_v9, %v1123_v53  ;;  %v1145_v16 = vadd.f32 %v1144_v61, %v2465_v34 }
 0x115   : > { %v1146_v62 = vpop.f32.mrf.mxu0  ;;  %v1269_v0 = vpop.f32.mrf.mxu1 }
 0x116   : > { %v1270_v7 = vadd.f32 %v1269_v0, %v1125_v1  ;;  %v1147_v50 = vadd.f32 %v1146_v62, %v2465_v34 }
 0x117   : > { %v1155_v10 = vpop.f32.mrf.mxu0  ;;  %v1274_v63 = vpop.f32.mrf.mxu1 }
 0x118   : > { %v1275_v31 = vadd.f32 %v1274_v63, %v1134_v2  ;;  %v1156_v51 = vadd.f32 %v1155_v10, %v2469_v46 }
 0x119   : > { %v1157_v12 = vpop.f32.mrf.mxu0  ;;  %v1276_v35 = vpop.f32.mrf.mxu1 }
 0x11a   : > { %v1277_v20 = vadd.f32 %v1276_v35, %v1136_v25  ;;  %v1158_v53 = vadd.f32 %v1157_v12, %v2469_v46 }
 0x11b   : > { %v1377_v36 = vpop.f32.mrf.mxu0  ;;  %v1281_v40 = vpop.f32.mrf.mxu1 }
 0x11c   : > { %v1378_v11 = vadd.f32 %v1377_v36, %v1268_v4  ;;  %v1282_v54 = vadd.f32 %v1281_v40, %v1145_v16 }
 0x11d   : > { %v1379_v41 = vpop.f32.mrf.mxu0  ;;  %v1283_v42 = vpop.f32.mrf.mxu1 }
 0x11e   : > { %v1380_v32 = vadd.f32 %v1379_v41, %v1270_v7  ;;  %v1284_v8 = vadd.f32 %v1283_v42, %v1147_v50 }
 0x11f   : > { %v1385_v43 = vpop.f32.mrf.mxu0  ;;  %v1288_v21 = vpop.f32.mrf.mxu1 }
 0x120   : > { %v1386_v28 = vadd.f32 %v1385_v43, %v1275_v31  ;;  %v1289_v34 = vadd.f32 %v1288_v21, %v1156_v51 }
 0x121   : > { %v1387_v22 = vpop.f32.mrf.mxu0  ;;  %v1290_v23 = vpop.f32.mrf.mxu1 }
 0x122   : > { %v1388_v61 = vadd.f32 %v1387_v22, %v1277_v20  ;;  %v1291_v1 = vadd.f32 %v1290_v23, %v1158_v53 }
 0x124   : > { %v1393_v29 = vpop.f32.mrf.mxu0 }
 0x125   : > { %v1483_v30 = vpop.f32.mrf.mxu1  ;;  %v1394_v63 = vadd.f32 %v1393_v29, %v1282_v54 }
 0x126   : > { %v1395_v44 = vpop.f32.mrf.mxu0  ;;  %v1484_v13 = vadd.f32 %v1483_v30, %v1378_v11 }
 0x127   : > { %v1485_v45 = vpop.f32.mrf.mxu1  ;;  %v1396_v62 = vadd.f32 %v1395_v44, %v1284_v8 }
 0x128   : > { %v1486_v15 = vadd.f32 %v1485_v45, %v1380_v32 }
 0x129   : > { %v1401_v47 = vpop.f32.mrf.mxu0 }
 0x12a   : > { %v1492_v49 = vpop.f32.mrf.mxu1  ;;  %v1402_v2 = vadd.f32 %v1401_v47, %v1289_v34 }
 0x12b   : > { %v1403_v52 = vpop.f32.mrf.mxu0  ;;  %v1493_v9 = vadd.f32 %v1492_v49, %v1386_v28 }
 0x12c   : > { %v1494_v56 = vpop.f32.mrf.mxu1  ;;  %v1404_v11 = vadd.f32 %v1403_v52, %v1291_v1 }
 0x12d   : > { %v1495_v30 = vadd.f32 %v1494_v56, %v1388_v61 }
 0x12f   : > { %v1501_v3 = vpop.f32.mrf.mxu1  ;;  %v1606_v57 = vpop.f32.mrf.mxu0 }
 0x130   : > { %v1607_v37 = vadd.f32 %v1606_v57, %v1484_v13  ;;  %v1502_v10 = vadd.f32 %v1501_v3, %v1394_v63 }
 0x131   : > { %v1503_v5 = vpop.f32.mrf.mxu1  ;;  %v1608_v6 = vpop.f32.mrf.mxu0 }
 0x132   : > { %v1609_v0 = vadd.f32 %v1608_v6, %v1486_v15  ;;  %v1504_v42 = vadd.f32 %v1503_v5, %v1396_v62 }
 0x133   : > { %v1510_v18 = vpop.f32.mrf.mxu1  ;;  %v1613_v24 = vpop.f32.mrf.mxu0 }
 0x134   : > { %v1614_v35 = vadd.f32 %v1613_v24, %v1493_v9  ;;  %v1511_v16 = vadd.f32 %v1510_v18, %v1402_v2 }
 0x135   : > { %v1512_v33 = vpop.f32.mrf.mxu1  ;;  %v1615_v14 = vpop.f32.mrf.mxu0 }
 0x136   : > { %v1616_v57 = vadd.f32 %v1615_v14, %v1495_v30  ;;  %v1513_v3 = vadd.f32 %v1512_v33, %v1404_v11 }
 0x137   : > { %v1620_v55 = vpop.f32.mrf.mxu0  ;;  %v1707_v58 = vpop.f32.mrf.mxu1 }
 0x138   : > { %v1708_v38 = vadd.f32 %v1707_v58, %v1607_v37  ;;  %v1621_v6 = vadd.f32 %v1620_v55, %v1502_v10 }
 0x139   : > { %v1622_v36 = vpop.f32.mrf.mxu0  ;;  %v1709_v41 = vpop.f32.mrf.mxu1 }
 0x13a   : > { %v1893_v43 = vmul.f32 -1.442695, %v1708_v38  ;;  %v1710_v45 = vadd.f32 %v1709_v41, %v1609_v0  ;;  %v1623_v12 = vadd.f32 %v1622_v36, %v1504_v42 }
 0x13b   : > { %v1714_v40 = vpop.f32.mrf.mxu1  ;;  %v1627_v29 = vpop.f32.mrf.mxu0 }
 0x13c   : > { %1933 = vpow2.f32 %v1893_v43  ;;  %v1894_v22 = vmul.f32 -1.442695, %v1710_v45  ;;  %v1715_v49 = vadd.f32 %v1714_v40, %v1614_v35  ;;  %v1628_v31 = vadd.f32 %v1627_v29, %v1511_v16 }
 0x13d   : > { %v1716_v4 = vpop.f32.mrf.mxu1  ;;  %v1629_v24 = vpop.f32.mrf.mxu0 }
 0x13e   : > { %1935 = vpow2.f32 %v1894_v22  ;;  %v1895_v56 = vmul.f32 -1.442695, %v1715_v49  ;;  %v1717_v7 = vadd.f32 %v1716_v4, %v1616_v57  ;;  %v1630_v32 = vadd.f32 %v1629_v24, %v1513_v3 }
 0x13f   : > { %v1721_v46 = vpop.f32.mrf.mxu1 }
 0x140   : > { %1937 = vpow2.f32 %v1895_v56  ;;  %v1896_v21 = vmul.f32 -1.442695, %v1717_v7  ;;  %v1722_v44 = vadd.f32 %v1721_v46, %v1621_v6 }
 0x141   : > { %v1723_v25 = vpop.f32.mrf.mxu1 }
 0x142   : > { %1939 = vpow2.f32 %v1896_v21  ;;  %v1897_v23 = vmul.f32 -1.442695, %v1722_v44  ;;  %v1724_v47 = vadd.f32 %v1723_v25, %v1623_v12 }
 0x143   : > { %v1728_v5 = vpop.f32.mrf.mxu1 }
 0x144   : > { %1941 = vpow2.f32 %v1897_v23  ;;  %v1898_v13 = vmul.f32 -1.442695, %v1724_v47  ;;  %v1729_v14 = vadd.f32 %v1728_v5, %v1628_v31 }
 0x145   : > { %v1730_v20 = vpop.f32.mrf.mxu1 }
 0x146   : > { %1943 = vpow2.f32 %v1898_v13  ;;  %v1899_v52 = vmul.f32 -1.442695, %v1729_v14  ;;  %v1731_v18 = vadd.f32 %v1730_v20, %v1630_v32 }
 0x148   : > { %1945 = vpow2.f32 %v1899_v52  ;;  %v1900_v28 = vmul.f32 -1.442695, %v1731_v18 }
 0x149   : > { %v1934_v15 = vpop.eup %1933 }
 0x14a   : > { %v1757_v37 = vadd.f32 1.0, %v1934_v15  ;;  %1947 = vpow2.f32 %v1900_v28 }
 0x14b   : > { %v1936_v33 = vpop.eup %1935 }
 0x14c   : > { %1949 = vrcp.f32 %v1757_v37  ;;  %v1758_v50 = vadd.f32 1.0, %v1936_v33 }
 0x14d   : > { %v1938_v51 = vpop.eup %1937 }
 0x14e   : > { %1951 = vrcp.f32 %v1758_v50  ;;  %v1759_v54 = vadd.f32 1.0, %v1938_v51 }
 0x14f   : > { %v1940_v55 = vpop.eup %1939 }
 0x150   : > { %1953 = vrcp.f32 %v1759_v54  ;;  %v1760_v58 = vadd.f32 1.0, %v1940_v55 }
 0x151   : > { %v1942_v61 = vpop.eup %1941 }
 0x152   : > { %1955 = vrcp.f32 %v1760_v58  ;;  %v1761_v9 = vadd.f32 1.0, %v1942_v61 }
 0x153   : > { %v1944_v0 = vpop.eup %1943 }
 0x154   : > { %1957 = vrcp.f32 %v1761_v9  ;;  %v1762_v38 = vadd.f32 1.0, %v1944_v0 }
 0x155   : > { %v1946_v8 = vpop.eup %1945 }
 0x156   : > { %1959 = vrcp.f32 %v1762_v38  ;;  %v1763_v63 = vadd.f32 1.0, %v1946_v8 }
 0x157   : > { %v1948_v36 = vpop.eup %1947 }
 0x158   : > { %1961 = vrcp.f32 %v1763_v63  ;;  %v1764_v41 = vadd.f32 1.0, %v1948_v36 }
 0x159   : > { %v1950_v30 = vpop.eup %1949 }
 0x15a   : > { %v1781_v35 = vmul.f32 %v1950_v30, %v2471_v17  ;;  %1963 = vrcp.f32 %v1764_v41 }
 0x15b   : > { %v1952_v43 = vpop.eup %1951 }
 0x15c   : > { %1789 = vst [vmem:[%s262_s15] sm:$0xff] %v1781_v35  ;;  %v1782_v45 = vmul.f32 %v1952_v43, %v2473_v26 }
 0x15d   : > { %v1954_v53 = vpop.eup %1953 }
 0x15e   : > { %1790 = vst [vmem:[%s262_s15 + $0x8] sm:$0xff] %v1782_v45  ;;  %v1783_v34 = vmul.f32 %v1954_v53, %v2475_v19 }
 0x15f   : > { %v1956_v62 = vpop.eup %1955 }
 0x160   : > { %1791 = vst [vmem:[%s262_s15 + $0x10] sm:$0xff] %v1783_v34  ;;  %v1784_v10 = vmul.f32 %v1956_v62, %v2477_v39 }
 0x161   : > { %v1958_v40 = vpop.eup %1957 }
 0x162   : > { %1792 = vst [vmem:[%s262_s15 + $0x18] sm:$0xff] %v1784_v10  ;;  %v1785_v57 = vmul.f32 %v1958_v40, %v2479_v48 }
 0x163   : > { %v1960_v22 = vpop.eup %1959 }
 0x164   : > { %1793 = vst [vmem:[%s262_s15 + $0x20] sm:$0xff] %v1785_v57  ;;  %v1786_v17 = vmul.f32 %v1960_v22, %v2481_v27 }
 0x165   : > { %v1962_v49 = vpop.eup %1961 }
 0x166   : > { %1794 = vst [vmem:[%s262_s15 + $0x28] sm:$0xff] %v1786_v17  ;;  %v1787_v26 = vmul.f32 %v1962_v49, %v2483_v60 }
 0x167   : > { %v1964_v1 = vpop.eup %1963 }
 0x168   : > { %1795 = vst [vmem:[%s262_s15 + $0x30] sm:$0xff] %v1787_v26  ;;  %v1788_v19 = vmul.f32 %v1964_v1, %v2485_v59 }
 0x16a   : > { %1796 = vst [vmem:[%s262_s15 + $0x38] sm:$0xff] %v1788_v19 }
 0x16b PF: > { %s15_s20 = sadd.s32 1, %s1987_s20   ;;  %s2523_s18 = smov %s1983_s19 }
 0x16c   : > { %p12_p5 = scmp.ge.s32.totalorder %s15_s20, 4   ;;  %s2524_s19 = smov %s2526_s21 }
 0x16e   :  { %14 = sbr.rel (!%p12_p5) target bundleno = 2 (0x2), region = 70 }

</bundles_post_ra>
